<compile_context>
chip_gen: v5e
topology: v5e:2x2
jax: 0.10.0
libtpu: 0.0.40
codegen_flags: <defaults>
</compile_context>

<pallas_src>
import jax
import jax.numpy as jnp
from jax.experimental import pallas as pl
from jax.experimental.pallas import tpu as pltpu


_PAIR_BUDGET_BYTES = 8 * 1024 * 1024   # one x-tile + one out-tile, single-buffered
_ROW_TILE_CAP = 2048                   # bounds lane-padded (tm, 1) const blocks
_VMEM_LIMIT_BYTES = 48 * 1024 * 1024   # leaves headroom on v7x (64 MiB physical)
_SPLIT_BYTES = 2 * 1024 * 1024         # split single-tile tensors >= this size


def _unnormalize_kernel(scale_ref, bias_ref, x_ref, o_ref):
    # scale_ref / bias_ref: (TM, 1) f32 per-row constants (one row per (n, c)).
    # x_ref / o_ref: (TM, TL) lane-dense tile.
    x = x_ref[...].astype(jnp.float32)
    o_ref[...] = (x * scale_ref[...] + bias_ref[...]).astype(o_ref.dtype)


def _multi_tensorcore_chip() -> bool:
    """Best-effort: True when the chip has >1 TensorCore (e.g. v7x)."""
    try:
        kind = jax.devices()[0].device_kind.lower()
    except Exception:
        return True  # unknown -> splitting costs at most ~0.35us, so allow it
    return not any(tag in kind for tag in ("v5", "v6"))


def _choose_tiles(num_rows: int, lane_width: int, itemsize: int):
    """Pick (tm, tl): tm multiple of 8/16 or == R; tl multiple of 128 or == L."""
    sub = 16 if itemsize < 4 else 8
    tile_elems = max(_PAIR_BUDGET_BYTES // (2 * itemsize), 8 * 128)

    if lane_width * sub <= tile_elems:
        # Full last dim fits with at least `sub` rows -> keep rows as the only
        # tiled axis (contiguous, fully lane-dense DMAs).
        tl = lane_width
        rows = min(tile_elems // max(lane_width, 1), _ROW_TILE_CAP)
        if rows >= num_rows:
            tm = num_rows
        else:
            tm = max((rows // sub) * sub, sub)
            if tm >= num_rows:
                tm = num_rows
    else:
        # Row is too wide: tile the lane dimension (multiple of 128) and keep
        # the minimum legal sublane count.
        tl = max((tile_elems // sub // 128) * 128, 128)
        tm = num_rows if num_rows <= sub else sub

    # Megacore (v7x): if the whole tensor fits a single (reasonably large)
    # tile, split it in two so both TensorCores get work.  Skipped on 1-TC
    # chips (v5e / v6e) where the extra grid step is pure overhead.
    if (tm == num_rows and tl == lane_width
            and num_rows * lane_width * itemsize >= _SPLIT_BYTES
            and _multi_tensorcore_chip()):
        if num_rows >= 2 * sub:
            half = (num_rows + 1) // 2
            tm = -(-half // sub) * sub          # ceil to sublane multiple, < R
        elif lane_width >= 256:
            half = (lane_width + 1) // 2
            tl = -(-half // 128) * 128          # ceil to lane multiple, < L

    return tm, tl


def unnormalize(x: jax.Array, mean=(0.0,), std=(1.0,), *, _tm=None, _tl=None) -> jax.Array:
    """De-standardize an NCHW image tensor: x * std[c] + mean[c] (channel-wise)."""
    if x.ndim != 4:
        raise ValueError(
            f"Expected tensor of size (N, C, H, W). Got shape = {x.shape}."
        )
    N, C, H, W = x.shape
    dtype = x.dtype
    itemsize = jnp.dtype(dtype).itemsize
    R, L = N * C, H * W

    # Keep the per-channel constants in f32 (don't quantize them to bf16/fp8);
    # broadcasting a length-1 mean/std to C mirrors PyTorch's [1,1,1,1] case.
    mean_f32 = jnp.broadcast_to(jnp.asarray(mean, jnp.float32).reshape(-1), (C,))
    std_f32 = jnp.broadcast_to(jnp.asarray(std, jnp.float32).reshape(-1), (C,))
    # NOTE: no `std != 0` host check -- unnormalize multiplies by std (no
    # division), and bool(jnp.all(...)) would force a sync / break under jit.
    # TODO(synk): the PyTorch module's ValueError on zero std has no sync-free
    # device-side equivalent; intentionally omitted.

    # Per-row (row = one (n, c) pair) scale and bias, shape (R, 1), f32.
    scale = jnp.tile(std_f32, (N,)).reshape(R, 1)
    bias = jnp.tile(mean_f32, (N,)).reshape(R, 1)

    x2d = x.reshape(R, L)

    if _tm is not None and _tl is not None:
        tm, tl = _tm, _tl          # test hook (exercise ragged-block path)
    else:
        tm, tl = _choose_tiles(R, L, itemsize)

    grid = (pl.cdiv(R, tm), pl.cdiv(L, tl))

    out2d = pl.pallas_call(
        _unnormalize_kernel,
        out_shape=jax.ShapeDtypeStruct((R, L), dtype),
        grid_spec=pltpu.PrefetchScalarGridSpec(
            num_scalar_prefetch=0,
            grid=grid,
            in_specs=[
                pl.BlockSpec((tm, 1), lambda i, j: (i, 0)),   # scale (f32)
                pl.BlockSpec((tm, 1), lambda i, j: (i, 0)),   # bias  (f32)
                pl.BlockSpec((tm, tl), lambda i, j: (i, j)),  # x, lane-dense
            ],
            out_specs=pl.BlockSpec((tm, tl), lambda i, j: (i, j)),
        ),
        compiler_params=pltpu.CompilerParams(
            dimension_semantics=("parallel", "parallel"),
            vmem_limit_bytes=_VMEM_LIMIT_BYTES,
        ),
        cost_estimate=pl.CostEstimate(
            flops=2 * R * L,
            transcendentals=0,
            bytes_accessed=2 * R * L * itemsize + 2 * R * 4,
        ),
    )(scale, bias, x2d)

    return out2d.reshape(N, C, H, W)


class Unnormalize:
    """Helper class mirroring the PyTorch nn.Module (inplace is moot in JAX)."""

    def __init__(self, mean=(0.0,), std=(1.0,), inplace: bool = False) -> None:
        self.mean = mean
        self.std = std
        self.inplace = inplace  # no-op under JAX's functional semantics

    def __call__(self, x: jax.Array) -> jax.Array:
        return unnormalize(x, self.mean, self.std)


if __name__ == "__main__":
    key = jax.random.PRNGKey(0)
    k1, k2 = jax.random.split(key)

    # --- Test 1: standard small NCHW tensor, auto-chosen tiles -------------
    N, C, H, W = 2, 4, 16, 16
    x = jax.random.normal(k1, (N, C, H, W), dtype=jnp.float32)
    mean = (0.485, 0.456, 0.406, 0.5)
    std = (0.229, 0.224, 0.225, 0.25)

    module = Unnormalize(mean=mean, std=std)
    out = jax.block_until_ready(module(x))

    mean_ref = jnp.asarray(mean, jnp.float32)[None, :, None, None]
    std_ref = jnp.asarray(std, jnp.float32)[None, :, None, None]
    ref = x * std_ref + mean_ref
    assert out.shape == (N, C, H, W)
    assert out.dtype == x.dtype
    assert jnp.allclose(out, ref, atol=1e-6, rtol=1e-6)

    # --- Test 2: ragged row + lane blocks (forced small tiles) -------------
    # R = 12 rows with tm = 8 (ragged last row block), L = 320 lanes with
    # tl = 128 (ragged last lane block): validates the cdiv-grid masked path.
    x2 = jax.random.normal(k2, (3, 4, 16, 20), dtype=jnp.float32)
    mean2 = (0.1, 0.2, 0.3, 0.4)
    std2 = (1.5, 0.5, 2.0, 0.25)
    out2 = jax.block_until_ready(unnormalize(x2, mean2, std2, _tm=8, _tl=128))
    ref2 = (x2 * jnp.asarray(std2, jnp.float32)[None, :, None, None]
            + jnp.asarray(mean2, jnp.float32)[None, :, None, None])
    assert out2.shape == x2.shape
    assert jnp.allclose(out2, ref2, atol=1e-6, rtol=1e-6)

    print("KERNEL_OK")
</pallas_src>

<mosaic_0001>
module attributes {stable_mosaic.version = 11 : i64} {
  func.func @_unnormalize_kernel(%arg0: i32, %arg1: i32, %arg2: memref<8x1xf32, #tpu.memory_space<vmem>>, %arg3: memref<8x1xf32, #tpu.memory_space<vmem>>, %arg4: memref<8x256xf32, #tpu.memory_space<vmem>>, %arg5: memref<8x256xf32, #tpu.memory_space<vmem>>) attributes {dimension_semantics = [#tpu.dimension_semantics<parallel>, #tpu.dimension_semantics<parallel>], iteration_bounds = array<i64: 1, 1>, scalar_prefetch = 0 : i64, scratch_operands = 0 : i64, tpu.core_type = #tpu.core_type<tc>, window_params = [{transform_indices = @transform_0, window_bounds = array<i64: 8, 1>}, {transform_indices = @transform_1, window_bounds = array<i64: 8, 1>}, {transform_indices = @transform_2, window_bounds = array<i64: 8, 256>}, {transform_indices = @transform_3, window_bounds = array<i64: 8, 256>}]} {
    %c0 = arith.constant 0 : index
    %c0_0 = arith.constant 0 : index
    %0 = vector.load %arg4[%c0, %c0_0] : memref<8x256xf32, #tpu.memory_space<vmem>>, vector<8x256xf32>
    %c0_1 = arith.constant 0 : index
    %c0_2 = arith.constant 0 : index
    %1 = vector.load %arg2[%c0_1, %c0_2] : memref<8x1xf32, #tpu.memory_space<vmem>>, vector<8x1xf32>
    %2 = vector.broadcast %1 : vector<8x1xf32> to vector<8x256xf32>
    %3 = arith.mulf %0, %2 : vector<8x256xf32>
    %c0_3 = arith.constant 0 : index
    %c0_4 = arith.constant 0 : index
    %4 = vector.load %arg3[%c0_3, %c0_4] : memref<8x1xf32, #tpu.memory_space<vmem>>, vector<8x1xf32>
    %5 = vector.broadcast %4 : vector<8x1xf32> to vector<8x256xf32>
    %6 = arith.addf %3, %5 : vector<8x256xf32>
    %c0_5 = arith.constant 0 : index
    %c0_6 = arith.constant 0 : index
    %7 = vector.load %arg5[%c0_5, %c0_6] : memref<8x256xf32, #tpu.memory_space<vmem>>, vector<8x256xf32>
    tpu.vector_store %arg5[%c0_5, %c0_6], %6 {strides = array<i32>} : memref<8x256xf32, #tpu.memory_space<vmem>>, vector<8x256xf32>,
    return
  }
  func.func @transform_0(%arg0: i32, %arg1: i32) -> (i32, i32) {
    %c0_i32 = arith.constant 0 : i32
    %c0_i32_0 = arith.constant 0 : i32
    return %arg0, %c0_i32 : i32, i32
  }
  func.func @transform_1(%arg0: i32, %arg1: i32) -> (i32, i32) {
    %c0_i32 = arith.constant 0 : i32
    %c0_i32_0 = arith.constant 0 : i32
    return %arg0, %c0_i32 : i32, i32
  }
  func.func @transform_2(%arg0: i32, %arg1: i32) -> (i32, i32) {
    %c0_i32 = arith.constant 0 : i32
    return %arg0, %arg1 : i32, i32
  }
  func.func @transform_3(%arg0: i32, %arg1: i32) -> (i32, i32) {
    %c0_i32 = arith.constant 0 : i32
    return %arg0, %arg1 : i32, i32
  }
}

</mosaic_0001>

<bundles_post_ra>
// kernel: tpu_custom_call.1
= control target key start
LH: loop header
LB: loop body
LE: loop exit
PB: predicated region body
PF: predicated region fallthrough
CT: control target
= control target key end

     0   :  { %s117_s0 = inlined_call_operand.vmem [shape: f32[8,1], index: 0, kind: input, shape index: {}]   ;;  %s118_s1 = inlined_call_operand.vmem [shape: f32[8,1], index: 1, kind: input, shape index: {}]   ;;  %s119_s2 = inlined_call_operand.vmem [shape: f32[8,256], index: 2, kind: input, shape index: {}]   ;;  %s120_s3 = inlined_call_operand.hbm [shape: f32[8,256], index: 3, kind: output, shape index: {}]  }
   0x1   :  { %v17_v0 = vld [vmem:[%s117_s0] sm:$0xff] }
   0x2   :  { %8 = vsyncpa [#allocation3], 0  ;;  %v80_v1 = vmov 0   ;;  %v25_v2 = vld [vmem:[%s118_s1] sm:$0xff]  ;;  %v16_v5 = vld [vmem:[%s119_s2 + $0x8] sm:$0xff]  ;;  %s81_s0 = smov [#allocation2]  }
   0x3   :  { %53 = vset.pattern.permute.xlu0 %v80_v1  ;;  %v15_v4 = vld [vmem:[%s119_s2] sm:$0xff]  ;;  %s40_s20 = sshll.u32 %s81_s0, 4  ;;  %s42_s23 = sshll.u32 %s120_s3, 4  ;;  %s41_s20 = int_to_ptr.vmem [resolvable:$true] %s40_s20  ;;  %s43_s23 = int_to_ptr.hbm [resolvable:$true] %s42_s23 }
   0x4   :  { %20 = vperm.xlu0 %53, %v17_v0  }
   0xc   :  { %28 = vperm.xlu0 %53, %v25_v2  }
  0x76   :  { %v21_v3 = vpop.permute.xlu0 %20 }
  0x77   :  { %v23_v6 = vmul.f32 %v21_v3, %v15_v4  ;;  %v24_v7 = vmul.f32 %v21_v3, %v16_v5 }
  0x7e   :  { %v29_v8 = vpop.permute.xlu0 %28 }
  0x7f   :  { %v31_v9 = vadd.f32 %v29_v8, %v23_v6  ;;  %v32_v10 = vadd.f32 %v29_v8, %v24_v7 }
  0x81   :  { %33 = vst [vmem:[#allocation2] sm:$0xff] %v31_v9 }
  0x82   :  { %34 = vst [vmem:[#allocation2 + $0x8] sm:$0xff] %v32_v10 }
  0x83   :  { %45 = dma.vmem_to_hbm [thread:$0]  %s41_s20, 256, %s43_s23, [#allocation3]  }
  0x84   :  { %78 = dma.done.wait [#allocation3], 256  }
  0x85   :  { %79 = vsyncadd [#allocation3], 4294967040 }
  0x86   :  { %50 = vsyncpa [#allocation3], 1 }

</bundles_post_ra>
